<compile_context>
chip_gen: v7x
topology: tpu7x:2x2x1
jax: 0.10.0
libtpu: 0.0.40
codegen_flags: <defaults>
</compile_context>

<pallas_src>
import functools

import jax
import jax.numpy as jnp
from jax.experimental import pallas as pl
from jax.experimental.pallas import tpu as pltpu


def _round_up(x, m):
    return (x + m - 1) // m * m


def _make_kernel(q_orig, v_orig, tile_v):
    inv_q = 1.0 / float(q_orig)
    inv_v = 1.0 / float(v_orig)

    def kernel(labels_ref, scores_ref, out_ref, rmax, rsum, rnom, v2t_acc):
        j = pl.program_id(0)
        nj = pl.num_programs(0)

        @pl.when(j == 0)
        def _init():
            rmax[...] = jnp.full_like(rmax, -jnp.inf)
            rsum[...] = jnp.zeros_like(rsum)
            rnom[...] = jnp.zeros_like(rnom)
            v2t_acc[...] = jnp.zeros_like(v2t_acc)

        s = scores_ref[...].astype(jnp.float32)                 # [Qp, TV]
        lab = labels_ref[...]                                   # [Qp, 1] int32
        col = jax.lax.broadcasted_iota(jnp.int32, s.shape, 1) + j * tile_v
        hit = col == lab                                        # [Qp, TV] bool

        # ---- t2v: online row logsumexp + masked gather of the label score ----
        tile_max = jnp.max(s, axis=1, keepdims=True)            # [Qp, 1]
        m_new = jnp.maximum(rmax[...], tile_max)
        rsum[...] = (rsum[...] * jnp.exp(rmax[...] - m_new)
                     + jnp.sum(jnp.exp(s - m_new), axis=1, keepdims=True))
        rmax[...] = m_new
        rnom[...] = rnom[...] + jnp.sum(jnp.where(hit, s, 0.0), axis=1,
                                        keepdims=True)

        # ---- v2t: per-column (all rows resident), one exp reused for den & nom ----
        col_max = jnp.max(s, axis=0, keepdims=True)             # [1, TV]
        e = jnp.exp(s - col_max)                                # [Qp, TV]
        den = col_max + jnp.log(jnp.sum(e, axis=0, keepdims=True))
        nom_sum = jnp.sum(jnp.where(hit, e, 0.0), axis=0, keepdims=True)
        nom = col_max + jnp.log(nom_sum)
        covered = nom_sum > 0.0        # video has >=1 query (also kills padded cols)
        # accumulate positionally; cross-lane reduce deferred to finalize
        v2t_acc[...] = v2t_acc[...] + jnp.where(covered, den - nom, 0.0)

        @pl.when(j == nj - 1)
        def _finalize():
            t2v_den = rmax[...] + jnp.log(rsum[...])            # [Qp, 1]
            row = jax.lax.broadcasted_iota(jnp.int32, t2v_den.shape, 0)
            row_ok = row < q_orig
            t2v_sum = jnp.sum(jnp.where(row_ok, t2v_den - rnom[...], 0.0),
                              axis=0, keepdims=True)            # [1, 1]
            v2t_sum = jnp.sum(v2t_acc[...], axis=1, keepdims=True)  # [1, 1]
            loss = t2v_sum * inv_q + v2t_sum * inv_v
            out_ref[...] = loss.astype(out_ref.dtype)

    return kernel


@functools.partial(jax.jit, static_argnames=("tile_v",))
def clip_nce_pallas(q2ctx_scores, labels, tile_v=512):
    """reduction='mean' path of clip_nce. Returns scalar loss (float32)."""
    Q, V = q2ctx_scores.shape
    Q_pad = _round_up(Q, 8)
    V128 = _round_up(V, 128)
    TV = _round_up(min(int(tile_v), V128), 128)
    V_pad = _round_up(V, TV)

    scores = q2ctx_scores
    if (Q_pad, V_pad) != (Q, V):
        scores = jnp.pad(scores, ((0, Q_pad - Q), (0, V_pad - V)),
                         constant_values=-1e30)
    labels_i32 = labels.astype(jnp.int32)
    if Q_pad != Q:
        labels_i32 = jnp.pad(labels_i32, (0, Q_pad - Q), constant_values=-1)
    labels_2d = labels_i32.reshape(Q_pad, 1)

    grid = (V_pad // TV,)
    out = pl.pallas_call(
        _make_kernel(Q, V, TV),
        out_shape=jax.ShapeDtypeStruct((1, 1), jnp.float32),
        grid_spec=pltpu.PrefetchScalarGridSpec(
            num_scalar_prefetch=0,
            grid=grid,
            in_specs=[
                pl.BlockSpec((Q_pad, 1), lambda j: (0, 0)),      # labels (resident)
                pl.BlockSpec((Q_pad, TV), lambda j: (0, j)),     # scores V-tile
            ],
            out_specs=pl.BlockSpec((1, 1), lambda j: (0, 0)),
            scratch_shapes=[
                pltpu.VMEM((Q_pad, 1), jnp.float32),             # running row max
                pltpu.VMEM((Q_pad, 1), jnp.float32),             # running row sumexp
                pltpu.VMEM((Q_pad, 1), jnp.float32),             # t2v nominator
                pltpu.VMEM((1, TV), jnp.float32),                # v2t per-lane accum
            ],
        ),
        compiler_params=pltpu.CompilerParams(
            dimension_semantics=("arbitrary",)),
    )(labels_2d, scores)
    return out[0, 0]


def clip_nce_ref(q2ctx_scores, labels):
    """Pure-JAX reference mirroring the PyTorch module (reduction='mean').

    Videos with no query (missing from label_dict) contribute 0 to the v2t
    mean but still count in its denominator, exactly as the PyTorch code does.
    """
    Q, V = q2ctx_scores.shape
    s = q2ctx_scores.astype(jnp.float32)
    t2v_nom = s[jnp.arange(Q), labels]
    t2v_den = jax.scipy.special.logsumexp(s, axis=1)
    mask = labels[:, None] == jnp.arange(V)[None, :]
    covered = mask.any(axis=0)
    s_masked = jnp.where(mask, s, -jnp.inf)
    v2t_nom = jax.scipy.special.logsumexp(s_masked, axis=0)
    v2t_den = jax.scipy.special.logsumexp(s, axis=0)
    v2t = jnp.where(covered, v2t_den - v2t_nom, 0.0)
    return jnp.mean(t2v_den - t2v_nom) + jnp.mean(v2t)


if __name__ == "__main__":
    key = jax.random.PRNGKey(0)

    # Case 1: small square batch, every video covered (permutation labels).
    k1, k2, k3, k4 = jax.random.split(key, 4)
    Q1, V1 = 8, 8
    scores1 = jax.random.normal(k1, (Q1, V1), jnp.float32)
    labels1 = jax.random.permutation(k2, jnp.arange(V1, dtype=jnp.int32))
    loss1 = jax.block_until_ready(clip_nce_pallas(scores1, labels1))
    ref1 = jax.block_until_ready(clip_nce_ref(scores1, labels1))
    assert jnp.allclose(loss1, ref1, rtol=1e-5, atol=2e-5), (loss1, ref1)

    # Case 2: rectangular batch, random labels (some videos uncovered),
    # exercises padding + multi-tile V grid + online row logsumexp carry.
    Q2, V2 = 24, 200
    scores2 = jax.random.normal(k3, (Q2, V2), jnp.float32)
    labels2 = jax.random.randint(k4, (Q2,), 0, V2, dtype=jnp.int32)
    loss2 = jax.block_until_ready(clip_nce_pallas(scores2, labels2, tile_v=128))
    ref2 = jax.block_until_ready(clip_nce_ref(scores2, labels2))
    assert jnp.allclose(loss2, ref2, rtol=1e-5, atol=2e-5), (loss2, ref2)

    print("KERNEL_OK")
</pallas_src>

<mosaic_0001>
module attributes {stable_mosaic.version = 11 : i64} {
  func.func @kernel(%arg0: i32, %arg1: memref<8x1xi32, #tpu.memory_space<vmem>>, %arg2: memref<8x128xf32, #tpu.memory_space<vmem>>, %arg3: memref<1x1xf32, #tpu.memory_space<vmem>>, %arg4: memref<8x1xf32, #tpu.memory_space<vmem>>, %arg5: memref<8x1xf32, #tpu.memory_space<vmem>>, %arg6: memref<8x1xf32, #tpu.memory_space<vmem>>, %arg7: memref<1x128xf32, #tpu.memory_space<vmem>>) attributes {dimension_semantics = [#tpu.dimension_semantics<arbitrary>], iteration_bounds = array<i64: 1>, scalar_prefetch = 0 : i64, scratch_operands = 4 : i64, tpu.core_type = #tpu.core_type<tc>, window_params = [{pipeline_mode = #tpu.pipeline_mode<synchronous>, transform_indices = @transform_0, window_bounds = array<i64: 8, 1>}, {transform_indices = @transform_1, window_bounds = array<i64: 8, 128>}, {pipeline_mode = #tpu.pipeline_mode<synchronous>, transform_indices = @transform_2, window_bounds = array<i64: 1, 1>}]} {
    %c0_i32 = arith.constant 0 : i32
    %0 = arith.cmpi eq, %arg0, %c0_i32 : i32
    %1 = arith.extui %0 : i1 to i32
    %c0_i32_0 = arith.constant 0 : i32
    %2 = arith.cmpi ne, %1, %c0_i32_0 : i32
    scf.if %2 {
      %cst_33 = arith.constant 0xFF800000 : f32
      %61 = vector.broadcast %cst_33 : f32 to vector<8x1xf32>
      %c0_34 = arith.constant 0 : index
      %c0_35 = arith.constant 0 : index
      %62 = vector.load %arg4[%c0_34, %c0_35] : memref<8x1xf32, #tpu.memory_space<vmem>>, vector<8x1xf32>
      tpu.vector_store %arg4[%c0_34, %c0_35], %61 {strides = array<i32>} : memref<8x1xf32, #tpu.memory_space<vmem>>, vector<8x1xf32>,
      %cst_36 = arith.constant 0.000000e+00 : f32
      %63 = vector.broadcast %cst_36 : f32 to vector<8x1xf32>
      %c0_37 = arith.constant 0 : index
      %c0_38 = arith.constant 0 : index
      %64 = vector.load %arg5[%c0_37, %c0_38] : memref<8x1xf32, #tpu.memory_space<vmem>>, vector<8x1xf32>
      tpu.vector_store %arg5[%c0_37, %c0_38], %63 {strides = array<i32>} : memref<8x1xf32, #tpu.memory_space<vmem>>, vector<8x1xf32>,
      %cst_39 = arith.constant 0.000000e+00 : f32
      %65 = vector.broadcast %cst_39 : f32 to vector<8x1xf32>
      %c0_40 = arith.constant 0 : index
      %c0_41 = arith.constant 0 : index
      %66 = vector.load %arg6[%c0_40, %c0_41] : memref<8x1xf32, #tpu.memory_space<vmem>>, vector<8x1xf32>
      tpu.vector_store %arg6[%c0_40, %c0_41], %65 {strides = array<i32>} : memref<8x1xf32, #tpu.memory_space<vmem>>, vector<8x1xf32>,
      %cst_42 = arith.constant 0.000000e+00 : f32
      %67 = vector.broadcast %cst_42 : f32 to vector<1x128xf32>
      %c0_43 = arith.constant 0 : index
      %c0_44 = arith.constant 0 : index
      %68 = vector.load %arg7[%c0_43, %c0_44] : memref<1x128xf32, #tpu.memory_space<vmem>>, vector<1x128xf32>
      tpu.vector_store %arg7[%c0_43, %c0_44], %67 {strides = array<i32>} : memref<1x128xf32, #tpu.memory_space<vmem>>, vector<1x128xf32>,
    } else {
    }
    %c0 = arith.constant 0 : index
    %c0_1 = arith.constant 0 : index
    %3 = vector.load %arg2[%c0, %c0_1] : memref<8x128xf32, #tpu.memory_space<vmem>>, vector<8x128xf32>
    %c0_2 = arith.constant 0 : index
    %c0_3 = arith.constant 0 : index
    %4 = vector.load %arg1[%c0_2, %c0_3] : memref<8x1xi32, #tpu.memory_space<vmem>>, vector<8x1xi32>
    %5 = tpu.iota {dimensions = array<i32: 1>} : vector<8x128xi32>
    %c128_i32 = arith.constant 128 : i32
    %6 = arith.muli %arg0, %c128_i32 : i32
    %7 = vector.broadcast %6 : i32 to vector<8x128xi32>
    %8 = arith.addi %5, %7 : vector<8x128xi32>
    %9 = vector.broadcast %4 : vector<8x1xi32> to vector<8x128xi32>
    %10 = arith.cmpi eq, %8, %9 : vector<8x128xi32>
    %cst = arith.constant dense<0xFF800000> : vector<8xf32>
    %11 = vector.multi_reduction <maximumf>, %3, %cst [1] : vector<8x128xf32> to vector<8xf32>
    %12 = vector.shape_cast %11 : vector<8xf32> to vector<8x1xf32>
    %c0_4 = arith.constant 0 : index
    %c0_5 = arith.constant 0 : index
    %13 = vector.load %arg4[%c0_4, %c0_5] : memref<8x1xf32, #tpu.memory_space<vmem>>, vector<8x1xf32>
    %14 = arith.maximumf %13, %12 : vector<8x1xf32>
    %c0_6 = arith.constant 0 : index
    %c0_7 = arith.constant 0 : index
    %15 = vector.load %arg5[%c0_6, %c0_7] : memref<8x1xf32, #tpu.memory_space<vmem>>, vector<8x1xf32>
    %c0_8 = arith.constant 0 : index
    %c0_9 = arith.constant 0 : index
    %16 = vector.load %arg4[%c0_8, %c0_9] : memref<8x1xf32, #tpu.memory_space<vmem>>, vector<8x1xf32>
    %17 = arith.subf %16, %14 : vector<8x1xf32>
    %18 = math.exp %17 : vector<8x1xf32>
    %19 = arith.mulf %15, %18 : vector<8x1xf32>
    %20 = vector.broadcast %14 : vector<8x1xf32> to vector<8x128xf32>
    %21 = arith.subf %3, %20 : vector<8x128xf32>
    %22 = math.exp %21 : vector<8x128xf32>
    %cst_10 = arith.constant dense<0.000000e+00> : vector<8xf32>
    %23 = vector.multi_reduction <add>, %22, %cst_10 [1] : vector<8x128xf32> to vector<8xf32>
    %24 = vector.shape_cast %23 : vector<8xf32> to vector<8x1xf32>
    %25 = arith.addf %19, %24 : vector<8x1xf32>
    %c0_11 = arith.constant 0 : index
    %c0_12 = arith.constant 0 : index
    %26 = vector.load %arg5[%c0_11, %c0_12] : memref<8x1xf32, #tpu.memory_space<vmem>>, vector<8x1xf32>
    tpu.vector_store %arg5[%c0_11, %c0_12], %25 {strides = array<i32>} : memref<8x1xf32, #tpu.memory_space<vmem>>, vector<8x1xf32>,
    %c0_13 = arith.constant 0 : index
    %c0_14 = arith.constant 0 : index
    %27 = vector.load %arg4[%c0_13, %c0_14] : memref<8x1xf32, #tpu.memory_space<vmem>>, vector<8x1xf32>
    tpu.vector_store %arg4[%c0_13, %c0_14], %14 {strides = array<i32>} : memref<8x1xf32, #tpu.memory_space<vmem>>, vector<8x1xf32>,
    %c0_15 = arith.constant 0 : index
    %c0_16 = arith.constant 0 : index
    %28 = vector.load %arg6[%c0_15, %c0_16] : memref<8x1xf32, #tpu.memory_space<vmem>>, vector<8x1xf32>
    %cst_17 = arith.constant 0.000000e+00 : f32
    %29 = vector.broadcast %cst_17 : f32 to vector<8x128xf32>
    %30 = arith.select %10, %3, %29 : vector<8x128xi1>, vector<8x128xf32>
    %cst_18 = arith.constant dense<0.000000e+00> : vector<8xf32>
    %31 = vector.multi_reduction <add>, %30, %cst_18 [1] : vector<8x128xf32> to vector<8xf32>
    %32 = vector.shape_cast %31 : vector<8xf32> to vector<8x1xf32>
    %33 = arith.addf %28, %32 : vector<8x1xf32>
    %c0_19 = arith.constant 0 : index
    %c0_20 = arith.constant 0 : index
    %34 = vector.load %arg6[%c0_19, %c0_20] : memref<8x1xf32, #tpu.memory_space<vmem>>, vector<8x1xf32>
    tpu.vector_store %arg6[%c0_19, %c0_20], %33 {strides = array<i32>} : memref<8x1xf32, #tpu.memory_space<vmem>>, vector<8x1xf32>,
    %cst_21 = arith.constant dense<0xFF800000> : vector<128xf32>
    %35 = vector.multi_reduction <maximumf>, %3, %cst_21 [0] : vector<8x128xf32> to vector<128xf32>
    %36 = vector.shape_cast %35 : vector<128xf32> to vector<1x128xf32>
    %37 = vector.broadcast %36 : vector<1x128xf32> to vector<8x128xf32>
    %38 = arith.subf %3, %37 : vector<8x128xf32>
    %39 = math.exp %38 : vector<8x128xf32>
    %cst_22 = arith.constant dense<0.000000e+00> : vector<128xf32>
    %40 = vector.multi_reduction <add>, %39, %cst_22 [0] : vector<8x128xf32> to vector<128xf32>
    %41 = vector.shape_cast %40 : vector<128xf32> to vector<1x128xf32>
    %42 = math.log %41 : vector<1x128xf32>
    %43 = arith.addf %36, %42 : vector<1x128xf32>
    %cst_23 = arith.constant 0.000000e+00 : f32
    %44 = vector.broadcast %cst_23 : f32 to vector<8x128xf32>
    %45 = arith.select %10, %39, %44 : vector<8x128xi1>, vector<8x128xf32>
    %cst_24 = arith.constant dense<0.000000e+00> : vector<128xf32>
    %46 = vector.multi_reduction <add>, %45, %cst_24 [0] : vector<8x128xf32> to vector<128xf32>
    %47 = vector.shape_cast %46 : vector<128xf32> to vector<1x128xf32>
    %48 = math.log %47 : vector<1x128xf32>
    %49 = arith.addf %36, %48 : vector<1x128xf32>
    %cst_25 = arith.constant 0.000000e+00 : f32
    %50 = vector.broadcast %cst_25 : f32 to vector<1x128xf32>
    %51 = arith.cmpf ogt, %47, %50 : vector<1x128xf32>
    %c0_26 = arith.constant 0 : index
    %c0_27 = arith.constant 0 : index
    %52 = vector.load %arg7[%c0_26, %c0_27] : memref<1x128xf32, #tpu.memory_space<vmem>>, vector<1x128xf32>
    %53 = arith.subf %43, %49 : vector<1x128xf32>
    %cst_28 = arith.constant 0.000000e+00 : f32
    %54 = vector.broadcast %cst_28 : f32 to vector<1x128xf32>
    %55 = arith.select %51, %53, %54 : vector<1x128xi1>, vector<1x128xf32>
    %56 = arith.addf %52, %55 : vector<1x128xf32>
    %c0_29 = arith.constant 0 : index
    %c0_30 = arith.constant 0 : index
    %57 = vector.load %arg7[%c0_29, %c0_30] : memref<1x128xf32, #tpu.memory_space<vmem>>, vector<1x128xf32>
    tpu.vector_store %arg7[%c0_29, %c0_30], %56 {strides = array<i32>} : memref<1x128xf32, #tpu.memory_space<vmem>>, vector<1x128xf32>,
    %c0_i32_31 = arith.constant 0 : i32
    %58 = arith.cmpi eq, %arg0, %c0_i32_31 : i32
    %59 = arith.extui %58 : i1 to i32
    %c0_i32_32 = arith.constant 0 : i32
    %60 = arith.cmpi ne, %59, %c0_i32_32 : i32
    scf.if %60 {
      %c0_33 = arith.constant 0 : index
      %c0_34 = arith.constant 0 : index
      %61 = vector.load %arg4[%c0_33, %c0_34] : memref<8x1xf32, #tpu.memory_space<vmem>>, vector<8x1xf32>
      %c0_35 = arith.constant 0 : index
      %c0_36 = arith.constant 0 : index
      %62 = vector.load %arg5[%c0_35, %c0_36] : memref<8x1xf32, #tpu.memory_space<vmem>>, vector<8x1xf32>
      %63 = math.log %62 : vector<8x1xf32>
      %64 = arith.addf %61, %63 : vector<8x1xf32>
      %65 = tpu.iota {dimensions = array<i32: 0>} : vector<8x1xi32>
      %c8_i32 = arith.constant 8 : i32
      %66 = vector.broadcast %c8_i32 : i32 to vector<8x1xi32>
      %67 = arith.cmpi slt, %65, %66 : vector<8x1xi32>
      %c0_37 = arith.constant 0 : index
      %c0_38 = arith.constant 0 : index
      %68 = vector.load %arg6[%c0_37, %c0_38] : memref<8x1xf32, #tpu.memory_space<vmem>>, vector<8x1xf32>
      %69 = arith.subf %64, %68 : vector<8x1xf32>
      %cst_39 = arith.constant 0.000000e+00 : f32
      %70 = vector.broadcast %cst_39 : f32 to vector<8x1xf32>
      %71 = arith.select %67, %69, %70 : vector<8x1xi1>, vector<8x1xf32>
      %cst_40 = arith.constant dense<0.000000e+00> : vector<1xf32>
      %72 = vector.multi_reduction <add>, %71, %cst_40 [0] : vector<8x1xf32> to vector<1xf32>
      %73 = vector.shape_cast %72 : vector<1xf32> to vector<1x1xf32>
      %c0_41 = arith.constant 0 : index
      %c0_42 = arith.constant 0 : index
      %74 = vector.load %arg7[%c0_41, %c0_42] : memref<1x128xf32, #tpu.memory_space<vmem>>, vector<1x128xf32>
      %cst_43 = arith.constant dense<0.000000e+00> : vector<1xf32>
      %75 = vector.multi_reduction <add>, %74, %cst_43 [1] : vector<1x128xf32> to vector<1xf32>
      %76 = vector.shape_cast %75 : vector<1xf32> to vector<1x1xf32>
      %cst_44 = arith.constant 1.250000e-01 : f32
      %77 = vector.broadcast %cst_44 : f32 to vector<1x1xf32>
      %78 = arith.mulf %73, %77 : vector<1x1xf32>
      %cst_45 = arith.constant 1.250000e-01 : f32
      %79 = vector.broadcast %cst_45 : f32 to vector<1x1xf32>
      %80 = arith.mulf %76, %79 : vector<1x1xf32>
      %81 = arith.addf %78, %80 : vector<1x1xf32>
      %c0_46 = arith.constant 0 : index
      %c0_47 = arith.constant 0 : index
      %82 = vector.load %arg3[%c0_46, %c0_47] : memref<1x1xf32, #tpu.memory_space<vmem>>, vector<1x1xf32>
      tpu.vector_store %arg3[%c0_46, %c0_47], %81 {strides = array<i32>} : memref<1x1xf32, #tpu.memory_space<vmem>>, vector<1x1xf32>,
    } else {
    }
    return
  }
  func.func @transform_0(%arg0: i32) -> (i32, i32) {
    %c0_i32 = arith.constant 0 : i32
    %c0_i32_0 = arith.constant 0 : i32
    %c0_i32_1 = arith.constant 0 : i32
    return %c0_i32, %c0_i32_0 : i32, i32
  }
  func.func @transform_1(%arg0: i32) -> (i32, i32) {
    %c0_i32 = arith.constant 0 : i32
    %c0_i32_0 = arith.constant 0 : i32
    return %c0_i32, %arg0 : i32, i32
  }
  func.func @transform_2(%arg0: i32) -> (i32, i32) {
    %c0_i32 = arith.constant 0 : i32
    %c0_i32_0 = arith.constant 0 : i32
    %c0_i32_1 = arith.constant 0 : i32
    return %c0_i32, %c0_i32_0 : i32, i32
  }
}

</mosaic_0001>

<bundles_post_ra>
// kernel: clip_nce_pallas.1
= control target key start
LH: loop header
LB: loop body
LE: loop exit
PB: predicated region body
PF: predicated region fallthrough
CT: control target
= control target key end

     0   :  { %s236_s0 = inlined_call_operand.vmem [shape: s32[8,1], index: 0, kind: input, shape index: {}]   ;;  %s237_s1 = inlined_call_operand.vmem [shape: f32[8,128], index: 1, kind: input, shape index: {}]   ;;  %s238_s2 = inlined_call_operand.hbm [shape: f32[1,1], index: 2, kind: output, shape index: {}]  }
   0x1   :  { %v204_v0 = vld [vmem:[%s237_s1] sm:$0xff] }
   0x2   :  { %v22_v1 = vld [vmem:[%s236_s0] sm:$0xff] }
   0x3   :  { %7 = vsyncpa [#allocation7], 0  ;;  %32 = vmax.xlane.f32.xlu0 %v204_v0  ;;  %v182_v2 = vmov 0   ;;  %vm16_vm0 = vcmask 7168   ;;  %v183_v3 = vmov -inf   ;;  %v184_v4 = vmov 0.0  }
   0x4   :  { %145 = vset.pattern.permute.xlu1 %v182_v2  ;;  %144 = vset.pattern.permute.xlu0 %v182_v2  ;;  %17 = vst.msk [vmem:[#allocation2] sm:$0xff] %vm16_vm0, %v183_v3  ;;  %20 = vst [vmem:[#allocation5] sm:$0x1] %v184_v4  ;;  %v61_v5 = vrot.slane %v204_v0, 4  ;;  %v23_v16 = vlaneseq  ;;  %vm117_vm3 = vcmask 1040384   ;;  %s185_s0 = smov [#allocation6]  }
   0x5   :  { %29 = vperm.xlu1 %145, %v22_v1   ;;  %18 = vst.msk [vmem:[#allocation3] sm:$0xff] %vm16_vm0, %v184_v4  ;;  %19 = vst.msk [vmem:[#allocation4] sm:$0xff] %vm16_vm0, %v184_v4  ;;  %s132_s1 = sshll.u32 %s185_s0, 4  ;;  %vm124_vm4 = vcmask 0   ;;  %s133_s1 = int_to_ptr.vmem [resolvable:$true] %s132_s1 }
   0x6   :  { %v62_v6 = vmax.f32 %v204_v0, %v61_v5  ;;  %v24_v18 = vand.u32 127, %v23_v16  ;;  %s158_s13 = scalar_lea.vmem %s133_s1, 16  ;;  %s162_s14 = scalar_lea.vmem %s133_s1, 32 }
   0x7   :  { %p159_p0 = scmp.ne.s32.totalorder %s133_s1, %s158_s13  ;;  %p163_p1 = scmp.lt.s32.totalorder %s133_s1, %s133_s1 }
   0x8   :  { %v63_v7 = vrot.slane %v62_v6, 2  ;;  %p164_p2 = scmp.lt.s32.totalorder %s162_s14, %s158_s13 }
   0xa   :  { %v64_v8 = vmax.f32 %v62_v6, %v63_v7  ;;  %p165_p3 = por %p164_p2, %p163_p1 }
   0xb   :  { %v34_v28 = vld [vmem:[#allocation2] sm:$0xff]  ;;  %v90_v40 = vld [vmem:[#allocation5] sm:$0x1] }
   0xc   :  { %v65_v9 = vrot.slane %v64_v8, 1  ;;  %v36_v53 = vld [vmem:[#allocation3] sm:$0xff]  ;;  %v55_v57 = vld [vmem:[#allocation4] sm:$0xff]  ;;  %p166_p4 = pnand %p165_p3, %p159_p0 }
   0xe   :  { %v66_v10 = vmax.f32 %v64_v8, %v65_v9 }
  0x10   :  { %v67_v11 = vsub.f32 %v204_v0, %v66_v10 }
  0x12   :  { %v68_v12 = vmul.f32 1.442695, %v67_v11 }
  0x14   :  { %146 = vpow2.f32 %v68_v12 }
  0x1e   :  { %v147_v13 = vpop.eup %146 }
  0x1f   :  { %v70_v14 = vrot.slane %v147_v13, 4 }
  0x21   :  { %v71_v15 = vadd.f32 %v147_v13, %v70_v14 }
  0x23   :  { %v72_v17 = vrot.slane %v71_v15, 2 }
  0x25   :  { %v73_v19 = vadd.f32 %v72_v17, %v71_v15 }
  0x27   :  { %v74_v21 = vrot.slane %v73_v19, 1 }
  0x29   :  { %v75_v24 = vadd.f32 %v74_v21, %v73_v19 }
  0x2b   :  { %148 = vlog2.f32 %v75_v24 }
  0x35   :  { %v149_v34 = vpop.eup %148 }
  0x36   :  { %v77_v35 = vmul.f32 0.6931472, %v149_v34 }
  0x38   :  { %v78_v37 = vadd.f32 %v77_v35, %v66_v10 }
  0x84   :  { %v30_v20 = vpop.permute.xlu1 %29 }
  0x85   :  { %vm31_vm1 = vcmp.eq.s32.totalorder %v24_v18, %v30_v20 }
  0x86   :  { %v79_v22 = vsel %vm31_vm1, %v147_v13, 0.0  ;;  %v56_v49 = vsel %vm31_vm1, %v204_v0, 0.0 }
  0x87   :  { %v80_v23 = vrot.slane %v79_v22, 4 }
  0x89   :  { %v81_v25 = vadd.f32 %v80_v23, %v79_v22 }
  0x8b   :  { %v82_v26 = vrot.slane %v81_v25, 2 }
  0x8d   :  { %v83_v27 = vadd.f32 %v82_v26, %v81_v25 }
  0x8f   :  { %v84_v29 = vrot.slane %v83_v27, 1 }
  0x90   :  { %v33_v30 = vpop.xlane.xlu0 %32 }
  0x91   :  { %v85_v31 = vadd.f32 %v84_v29, %v83_v27  ;;  %v35_v32 = vmax.f32 %v34_v28, %v33_v30 }
  0x93   :  { %150 = vlog2.f32 %v85_v31  ;;  %v37_v33 = vsub.f32 %v34_v28, %v35_v32  ;;  %54 = vst.msk [vmem:[#allocation2] sm:$0xff] %vm16_vm0, %v35_v32  ;;  %43 = vperm.xlu0 %144, %v35_v32   ;;  %vm89_vm2 = vcmp.gt.f32.partialorder %v85_v31, 0.0 }
  0x95   :  { %v38_v51 = vmul.f32 1.442695, %v37_v33 }
  0x9a   :  { %v98_v63 = vld [vmem:[#allocation2] sm:$0xff] }
  0x9d   :  { %v151_v36 = vpop.eup %150 }
  0x9e   :  { %v87_v38 = vmul.f32 0.6931472, %v151_v36 }
  0xa0   :  { %v88_v39 = vadd.f32 %v87_v38, %v66_v10 }
  0xa2   :  { %v91_v41 = vsub.f32 %v78_v37, %v88_v39 }
  0xa4   :  { %v92_v42 = vsel %vm89_vm2, %v91_v41, 0.0 }
  0xa5   :  { %v93_v43 = vadd.f32 %v92_v42, %v90_v40 }
  0xa7   :  { %94 = vst [vmem:[#allocation5] sm:$0x1] %v93_v43 }
  0xae   :  { %v116_v48 = vld [vmem:[#allocation5] sm:$0x1] }
  0xaf   :  { %v118_v50 = vsel %vm117_vm3, %v116_v48, 0.0 }
 0x112   :  { %v44_v44 = vpop.permute.xlu0 %43 }
 0x113   :  { %v46_v45 = vsub.f32 %v204_v0, %v44_v44 }
 0x115   :  { %v47_v46 = vmul.f32 1.442695, %v46_v45 }
 0x117   :  { %152 = vpow2.f32 %v47_v46 }
 0x118   :  { %154 = vpow2.f32 %v38_v51 }
 0x121   :  { %v153_v47 = vpop.eup %152 }
 0x122   :  { %49 = vadd.xlane.f32.xlu1 %v153_v47  ;;  %v155_v52 = vpop.eup %154 }
 0x123   :  { %v40_v54 = vmul.f32 %v155_v52, %v36_v53 }
 0x126   :  { %57 = vadd.xlane.f32.xlu1 %v56_v49 }
 0x12a   :  { %119 = vadd.xlane.f32.xlu1 %v118_v50 }
 0x1af   :  { %v50_v55 = vpop.xlane.xlu1 %49 }
 0x1b0   :  { %v51_v56 = vadd.f32 %v50_v55, %v40_v54 }
 0x1b2   :  { %53 = vst.msk [vmem:[#allocation3] sm:$0xff] %vm16_vm0, %v51_v56 }
 0x1b3   :  { %v58_v58 = vpop.xlane.xlu1 %57 }
 0x1b4   :  { %v59_v59 = vadd.f32 %v58_v58, %v55_v57 }
 0x1b6   :  { %60 = vst.msk [vmem:[#allocation4] sm:$0xff] %vm16_vm0, %v59_v59 }
 0x1b7   :  { %v120_v9 = vpop.xlane.xlu1 %119 }
 0x1b8   :  { %v122_v12 = vmul.f32 0.125, %v120_v9 }
 0x1b9   :  { %v99_v60 = vld [vmem:[#allocation3] sm:$0xff] }
 0x1ba   :  { %156 = vlog2.f32 %v99_v60 }
 0x1bd   :  { %v106_v1 = vld [vmem:[#allocation4] sm:$0xff] }
 0x1c4   :  { %v157_v61 = vpop.eup %156 }
 0x1c5   :  { %v101_v62 = vmul.f32 0.6931472, %v157_v61 }
 0x1c7   :  { %v102_v0 = vadd.f32 %v101_v62, %v98_v63 }
 0x1c9   :  { %v107_v2 = vsub.f32 %v102_v0, %v106_v1 }
 0x1cb   :  { %v109_v3 = vsel %vm16_vm0, %v107_v2, 0.0 }
 0x1cc   :  { %v110_v4 = vrot.slane %v109_v3, 4 }
 0x1ce   :  { %v111_v5 = vadd.f32 %v110_v4, %v109_v3 }
 0x1d0   :  { %v112_v6 = vrot.slane %v111_v5, 2 }
 0x1d2   :  { %v113_v7 = vadd.f32 %v112_v6, %v111_v5 }
 0x1d4   :  { %v114_v8 = vrot.slane %v113_v7, 1 }
 0x1d6   :  { %v115_v10 = vadd.f32 %v114_v8, %v113_v7 }
 0x1d8   :  { %v121_v11 = vmul.f32 0.125, %v115_v10 }
 0x1da   :  { %v123_v13 = vadd.f32 %v122_v12, %v121_v11 }
 0x1dc   :  { %125 = vst.msk [vmem:[#allocation6] sm:$0x1] %vm124_vm4, %v123_v13 }
 0x1dd   :  { %169 = shalt.err (!%p166_p4)
}
 0x1de   :  { %s170_s17 = scalar_lea.hbm %s238_s2, 16 }
 0x1df   :  { %p171_p5 = scmp.ne.s32.totalorder %s238_s2, %s170_s17  ;;  %p174_p6 = scmp.lt.u32.totalorder %s170_s17, %s238_s2 }
 0x1e1   :  { %p176_p7 = pnand %p174_p6, %p171_p5 }
 0x1e3   :  { %179 = shalt.err (!%p176_p7)
}
 0x1e4   :  { %135 = dma.vmem_to_hbm [thread:$0]  %s133_s1, 16, %s238_s2, [#allocation7]  }
 0x1e5   :  { %180 = dma.done.wait [#allocation7], 16  }
 0x1e6   :  { %181 = vsyncadd [#allocation7], 4294967280 }
 0x1e7   :  { %139 = vsyncpa [#allocation7], 1 }

</bundles_post_ra>
